<compile_context>
chip_gen: v5e
topology: v5e:2x2
jax: 0.10.0
libtpu: 0.0.40
codegen_flags: <defaults>
</compile_context>

<pallas_src>
import functools

import jax
import jax.numpy as jnp
from jax import lax
from jax.experimental import pallas as pl
from jax.experimental.pallas import tpu as pltpu


def latent_gnn_kernel(x_ref, w_cat_ref, b_v2l_ref, w_res_ref,
                      bn_scale_ref, bn_shift_ref, out_ref, *, nodes):
    # One batch element per grid step.
    x = x_ref[0]                                     # (C, HW) f32 (exact residual)
    xb = x.astype(jnp.bfloat16)                      # bf16 copy for the MXU (in VMEM)

    w_cat = w_cat_ref[...]                           # (nodes+cr, C) bf16  [w_v2l ; w_red]
    w_res = w_res_ref[...]                           # (C, cr)       bf16
    bias = b_v2l_ref[...]                            # (nodes, 1)    f32
    scale = bn_scale_ref[...]                        # (C, 1)        f32
    shift = bn_shift_ref[...]                        # (C, 1)        f32

    # Fused reduction + vis2latent 1x1 convs: a single MXU pass over x.
    xw = lax.dot_general(w_cat, xb, (((1,), (0,)), ((), ())),
                         preferred_element_type=jnp.float32)       # (nodes+cr, HW)
    v2l = xw[:nodes] + bias                                         # (nodes, HW)
    x_red = xw[nodes:]                                              # (cr, HW)

    # z = x_reduce @ vis2latent^T  (transpose folded into the contraction).
    z = lax.dot_general(x_red, v2l, (((1,), (1,)), ((), ())),
                        preferred_element_type=jnp.float32)         # (cr, nodes)

    # affinity = z^T @ z  (symmetric), contraction over cr.
    aff = lax.dot_general(z, z, (((0,), (0,)), ((), ())),
                          preferred_element_type=jnp.float32)       # (nodes, nodes)

    # PyTorch softmax(dim=1) == column softmax.  aff is symmetric, so take the
    # cheap lane-axis (row) softmax and fold the transpose into the z_hat
    # contraction below: softmax_col(aff) == softmax_row(aff)^T.
    m = jnp.max(aff, axis=-1, keepdims=True)
    e = jnp.exp(aff - m)
    inv = pl.reciprocal(jnp.sum(e, axis=-1, keepdims=True), approx=True)  # EUP slot
    p = e * inv                                                     # (nodes, nodes)

    # z_hat = z @ softmax_col(aff) = z @ p^T
    z_hat = lax.dot_general(z, p, (((1,), (1,)), ((), ())),
                            preferred_element_type=jnp.float32)     # (cr, nodes)

    # x_new = z_hat @ vis2latent
    x_new = lax.dot_general(z_hat, v2l, (((1,), (0,)), ((), ())),
                            preferred_element_type=jnp.float32)     # (cr, HW)

    # restore 1x1 conv (bf16 MXU, f32 accumulate).
    x_rest = lax.dot_general(w_res, x_new.astype(jnp.bfloat16),
                             (((1,), (0,)), ((), ())),
                             preferred_element_type=jnp.float32)    # (C, HW)

    # BatchNorm2d (eval, folded per-channel affine) + ReLU + residual (f32 x).
    bn = x_rest * scale + shift
    out_ref[0] = (x + jnp.maximum(bn, 0.0)).astype(out_ref.dtype)


def latent_gnn(x_nchw, params, nodes, *, out_dtype=jnp.float32):
    N, C, H, W = x_nchw.shape
    Cr = C // 4
    HW = H * W

    # NCHW-native: only a free collapse of trailing dims, x stays f32.
    x_flat = x_nchw.reshape(N, C, HW).astype(jnp.float32)

    # Merge the two 1x1 conv weights: [vis2latent ; reduction] -> (nodes+Cr, C).
    w_cat = jnp.concatenate([params["w_v2l"], params["w_red"]],
                            axis=0).astype(jnp.bfloat16)
    b_v2l = params["b_v2l"].reshape(-1, 1).astype(jnp.float32)        # (nodes, 1)
    w_res = params["w_res"].astype(jnp.bfloat16)                      # (C, Cr)
    bn_scale = params["bn_scale"].reshape(-1, 1).astype(jnp.float32)  # (C, 1)
    bn_shift = params["bn_shift"].reshape(-1, 1).astype(jnp.float32)  # (C, 1)

    # Rough per-step VMEM need: double-buffered x/out blocks + the major f32
    # temporaries (xw, x_new, x_rest) + the in-VMEM bf16 copy of the x tile.
    out_elt = jnp.dtype(out_dtype).itemsize
    step_bytes = (2 * C * HW * 4 + 2 * C * HW * out_elt
                  + (nodes + Cr) * HW * 4 + Cr * HW * 4 + C * HW * 4
                  + C * HW * 2 + (1 << 20))
    vmem_limit = int(min(max(step_bytes, 32 << 20), 64 << 20))

    kernel = functools.partial(latent_gnn_kernel, nodes=nodes)

    out_flat = pl.pallas_call(
        kernel,
        out_shape=jax.ShapeDtypeStruct((N, C, HW), out_dtype),
        grid_spec=pltpu.PrefetchScalarGridSpec(
            num_scalar_prefetch=0,
            # One element per step: pipelined DMA/compute overlap and >=2
            # "parallel" steps so v7x megacore can split the batch.
            grid=(N,),
            in_specs=[
                pl.BlockSpec((1, C, HW), lambda n: (n, 0, 0)),      # x (f32)
                pl.BlockSpec((nodes + Cr, C), lambda n: (0, 0)),    # [w_v2l;w_red]
                pl.BlockSpec((nodes, 1), lambda n: (0, 0)),         # v2l bias
                pl.BlockSpec((C, Cr), lambda n: (0, 0)),            # restore W
                pl.BlockSpec((C, 1), lambda n: (0, 0)),             # BN scale
                pl.BlockSpec((C, 1), lambda n: (0, 0)),             # BN shift
            ],
            out_specs=pl.BlockSpec((1, C, HW), lambda n: (n, 0, 0)),
        ),
        compiler_params=pltpu.CompilerParams(
            dimension_semantics=("parallel",),
            vmem_limit_bytes=vmem_limit),
    )(x_flat, w_cat, b_v2l, w_res, bn_scale, bn_shift)

    return out_flat.reshape(N, C, H, W)


def latent_gnn_reference(x_nchw, params, nodes):
    """Pure-JAX f32 reference mirroring the PyTorch forward (NCHW math)."""
    N, C, H, W = x_nchw.shape
    HW = H * W
    xf = x_nchw.reshape(N, C, HW)
    x_red = jnp.einsum("rc,ncp->nrp", params["w_red"], xf)            # (N, Cr, HW)
    v2l = (jnp.einsum("kc,ncp->nkp", params["w_v2l"], xf)
           + params["b_v2l"][None, :, None])                          # (N, nodes, HW)
    z = jnp.matmul(x_red, jnp.transpose(v2l, (0, 2, 1)))              # (N, Cr, nodes)
    aff = jnp.matmul(jnp.transpose(z, (0, 2, 1)), z)                  # (N, nodes, nodes)
    aff = jax.nn.softmax(aff, axis=1)                                 # PyTorch dim=1
    z_hat = jnp.matmul(z, aff)                                        # (N, Cr, nodes)
    x_new = jnp.matmul(z_hat, v2l)                                    # (N, Cr, HW)
    x_rest = jnp.einsum("cr,nrp->ncp", params["w_res"], x_new)        # (N, C, HW)
    bn = (x_rest * params["bn_scale"][None, :, None]
          + params["bn_shift"][None, :, None])
    out = xf + jnp.maximum(bn, 0.0)
    return out.reshape(N, C, H, W)


def init_params(key, C, nodes):
    Cr = C // 4
    k = jax.random.split(key, 6)
    w_red = jax.random.normal(k[0], (Cr, C), jnp.float32) * 0.1       # reduction (C->Cr)
    w_v2l = jax.random.normal(k[1], (nodes, C), jnp.float32) * 0.1    # vis2latent (C->nodes)
    b_v2l = jax.random.normal(k[2], (nodes,), jnp.float32) * 0.1
    w_res = jax.random.normal(k[3], (C, Cr), jnp.float32) * 0.1       # restore (Cr->C)
    gamma = 1.0 + 0.05 * jax.random.normal(k[4], (C,), jnp.float32)
    beta = 0.05 * jax.random.normal(k[5], (C,), jnp.float32)
    running_mean = jnp.zeros((C,), jnp.float32)
    running_var = jnp.ones((C,), jnp.float32)
    eps = 1e-5
    scale = gamma / jnp.sqrt(running_var + eps)
    shift = beta - running_mean * scale
    return {"w_red": w_red, "w_v2l": w_v2l, "b_v2l": b_v2l, "w_res": w_res,
            "bn_scale": scale, "bn_shift": shift}


if __name__ == "__main__":
    N, C, H, W = 2, 16, 8, 8        # in_channels=16 -> inter_channels=4
    NODES = 16

    key = jax.random.PRNGKey(0)
    kx, kp = jax.random.split(key)
    x = jax.random.normal(kx, (N, C, H, W), jnp.float32)
    params = init_params(kp, C, NODES)

    ref = latent_gnn_reference(x, params, NODES)

    # f32-output path (default).
    out = jax.block_until_ready(latent_gnn(x, params, NODES))
    assert out.shape == (N, C, H, W)
    err = float(jnp.max(jnp.abs(out - ref)))
    assert jnp.allclose(out, ref, atol=1e-1, rtol=1e-1), f"f32 mismatch, max abs err {err}"

    # bf16-output path (halved writeback traffic for tolerant consumers).
    out_bf16 = jax.block_until_ready(latent_gnn(x, params, NODES, out_dtype=jnp.bfloat16))
    err_bf16 = float(jnp.max(jnp.abs(out_bf16.astype(jnp.float32) - ref)))
    assert jnp.allclose(out_bf16.astype(jnp.float32), ref, atol=1.5e-1, rtol=1e-1), \
        f"bf16 mismatch, max abs err {err_bf16}"

    print("KERNEL_OK")
</pallas_src>

<mosaic_0001>
module attributes {stable_mosaic.version = 11 : i64} {
  func.func @latent_gnn_kernel(%arg0: i32, %arg1: memref<1x16x64xf32, #tpu.memory_space<vmem>>, %arg2: memref<20x16xbf16, #tpu.memory_space<vmem>>, %arg3: memref<16x1xf32, #tpu.memory_space<vmem>>, %arg4: memref<16x4xbf16, #tpu.memory_space<vmem>>, %arg5: memref<16x1xf32, #tpu.memory_space<vmem>>, %arg6: memref<16x1xf32, #tpu.memory_space<vmem>>, %arg7: memref<1x16x64xf32, #tpu.memory_space<vmem>>) attributes {dimension_semantics = [#tpu.dimension_semantics<parallel>], iteration_bounds = array<i64: 2>, scalar_prefetch = 0 : i64, scratch_operands = 0 : i64, tpu.core_type = #tpu.core_type<tc>, window_params = [{transform_indices = @transform_0, window_bounds = array<i64: 1, 16, 64>}, {pipeline_mode = #tpu.pipeline_mode<synchronous>, transform_indices = @transform_1, window_bounds = array<i64: 20, 16>}, {pipeline_mode = #tpu.pipeline_mode<synchronous>, transform_indices = @transform_2, window_bounds = array<i64: 16, 1>}, {pipeline_mode = #tpu.pipeline_mode<synchronous>, transform_indices = @transform_3, window_bounds = array<i64: 16, 4>}, {pipeline_mode = #tpu.pipeline_mode<synchronous>, transform_indices = @transform_4, window_bounds = array<i64: 16, 1>}, {pipeline_mode = #tpu.pipeline_mode<synchronous>, transform_indices = @transform_5, window_bounds = array<i64: 16, 1>}, {transform_indices = @transform_6, window_bounds = array<i64: 1, 16, 64>}]} {
    %c0 = arith.constant 0 : index
    %c0_0 = arith.constant 0 : index
    %c0_1 = arith.constant 0 : index
    %0 = vector.load %arg1[%c0, %c0_0, %c0_1] : memref<1x16x64xf32, #tpu.memory_space<vmem>>, vector<1x16x64xf32>
    %1 = vector.shape_cast %0 : vector<1x16x64xf32> to vector<16x64xf32>
    %2 = arith.truncf %1 : vector<16x64xf32> to vector<16x64xbf16>
    %c0_2 = arith.constant 0 : index
    %c0_3 = arith.constant 0 : index
    %3 = vector.load %arg2[%c0_2, %c0_3] : memref<20x16xbf16, #tpu.memory_space<vmem>>, vector<20x16xbf16>
    %c0_4 = arith.constant 0 : index
    %c0_5 = arith.constant 0 : index
    %4 = vector.load %arg4[%c0_4, %c0_5] : memref<16x4xbf16, #tpu.memory_space<vmem>>, vector<16x4xbf16>
    %c0_6 = arith.constant 0 : index
    %c0_7 = arith.constant 0 : index
    %5 = vector.load %arg3[%c0_6, %c0_7] : memref<16x1xf32, #tpu.memory_space<vmem>>, vector<16x1xf32>
    %c0_8 = arith.constant 0 : index
    %c0_9 = arith.constant 0 : index
    %6 = vector.load %arg5[%c0_8, %c0_9] : memref<16x1xf32, #tpu.memory_space<vmem>>, vector<16x1xf32>
    %c0_10 = arith.constant 0 : index
    %c0_11 = arith.constant 0 : index
    %7 = vector.load %arg6[%c0_10, %c0_11] : memref<16x1xf32, #tpu.memory_space<vmem>>, vector<16x1xf32>
    %cst = arith.constant dense<0.000000e+00> : vector<20x64xf32>
    %8 = tpu.matmul %3, %2, %cst {dimension_numbers = #tpu.dot_dimension_numbers<[1], [0], [0], [1], [0, 0, 1, 1], [], []>} : vector<20x16xbf16>, vector<16x64xbf16>, vector<20x64xf32> -> vector<20x64xf32>
    %9 = vector.extract_strided_slice %8 {offsets = [0, 0], sizes = [16, 64], strides = [1, 1]} : vector<20x64xf32> to vector<16x64xf32>
    %10 = vector.broadcast %5 : vector<16x1xf32> to vector<16x64xf32>
    %11 = arith.addf %9, %10 : vector<16x64xf32>
    %12 = vector.extract_strided_slice %8 {offsets = [16, 0], sizes = [4, 64], strides = [1, 1]} : vector<20x64xf32> to vector<4x64xf32>
    %cst_12 = arith.constant dense<0.000000e+00> : vector<4x16xf32>
    %13 = tpu.matmul %12, %11, %cst_12 {dimension_numbers = #tpu.dot_dimension_numbers<[1], [1], [0], [0], [0, 0, 1, 0], [], []>} : vector<4x64xf32>, vector<16x64xf32>, vector<4x16xf32> -> vector<4x16xf32>
    %cst_13 = arith.constant dense<0.000000e+00> : vector<16x16xf32>
    %14 = tpu.matmul %13, %13, %cst_13 {dimension_numbers = #tpu.dot_dimension_numbers<[0], [0], [1], [1], [0, 1, 1, 1], [], []>} : vector<4x16xf32>, vector<4x16xf32>, vector<16x16xf32> -> vector<16x16xf32>
    %cst_14 = arith.constant dense<0xFF800000> : vector<16xf32>
    %15 = vector.multi_reduction <maximumf>, %14, %cst_14 [1] : vector<16x16xf32> to vector<16xf32>
    %16 = vector.shape_cast %15 : vector<16xf32> to vector<16x1xf32>
    %17 = vector.broadcast %16 : vector<16x1xf32> to vector<16x16xf32>
    %18 = arith.subf %14, %17 : vector<16x16xf32>
    %19 = math.exp %18 : vector<16x16xf32>
    %cst_15 = arith.constant dense<0.000000e+00> : vector<16xf32>
    %20 = vector.multi_reduction <add>, %19, %cst_15 [1] : vector<16x16xf32> to vector<16xf32>
    %21 = vector.shape_cast %20 : vector<16xf32> to vector<16x1xf32>
    %22 = tpu.reciprocal %21 {approx = true} : vector<16x1xf32> -> vector<16x1xf32>
    %23 = vector.broadcast %22 : vector<16x1xf32> to vector<16x16xf32>
    %24 = arith.mulf %19, %23 : vector<16x16xf32>
    %cst_16 = arith.constant dense<0.000000e+00> : vector<4x16xf32>
    %25 = tpu.matmul %13, %24, %cst_16 {dimension_numbers = #tpu.dot_dimension_numbers<[1], [1], [0], [0], [0, 0, 1, 0], [], []>} : vector<4x16xf32>, vector<16x16xf32>, vector<4x16xf32> -> vector<4x16xf32>
    %cst_17 = arith.constant dense<0.000000e+00> : vector<4x64xf32>
    %26 = tpu.matmul %25, %11, %cst_17 {dimension_numbers = #tpu.dot_dimension_numbers<[1], [0], [0], [1], [0, 0, 1, 1], [], []>} : vector<4x16xf32>, vector<16x64xf32>, vector<4x64xf32> -> vector<4x64xf32>
    %27 = arith.truncf %26 : vector<4x64xf32> to vector<4x64xbf16>
    %cst_18 = arith.constant dense<0.000000e+00> : vector<16x64xf32>
    %28 = tpu.matmul %4, %27, %cst_18 {dimension_numbers = #tpu.dot_dimension_numbers<[1], [0], [0], [1], [0, 0, 1, 1], [], []>} : vector<16x4xbf16>, vector<4x64xbf16>, vector<16x64xf32> -> vector<16x64xf32>
    %29 = vector.broadcast %6 : vector<16x1xf32> to vector<16x64xf32>
    %30 = arith.mulf %28, %29 : vector<16x64xf32>
    %31 = vector.broadcast %7 : vector<16x1xf32> to vector<16x64xf32>
    %32 = arith.addf %30, %31 : vector<16x64xf32>
    %cst_19 = arith.constant 0.000000e+00 : f32
    %33 = vector.broadcast %cst_19 : f32 to vector<16x64xf32>
    %34 = arith.maximumf %32, %33 : vector<16x64xf32>
    %35 = arith.addf %1, %34 : vector<16x64xf32>
    %c0_20 = arith.constant 0 : index
    %c0_21 = arith.constant 0 : index
    %c0_22 = arith.constant 0 : index
    %36 = vector.load %arg7[%c0_20, %c0_21, %c0_22] : memref<1x16x64xf32, #tpu.memory_space<vmem>>, vector<1x16x64xf32>
    %37 = vector.shape_cast %36 : vector<1x16x64xf32> to vector<16x64xf32>
    %38 = vector.shape_cast %35 : vector<16x64xf32> to vector<1x16x64xf32>
    tpu.vector_store %arg7[%c0_20, %c0_21, %c0_22], %38 {strides = array<i32>} : memref<1x16x64xf32, #tpu.memory_space<vmem>>, vector<1x16x64xf32>,
    return
  }
  func.func @transform_0(%arg0: i32) -> (i32, i32, i32) {
    %c0_i32 = arith.constant 0 : i32
    %c0_i32_0 = arith.constant 0 : i32
    %c0_i32_1 = arith.constant 0 : i32
    return %arg0, %c0_i32, %c0_i32_0 : i32, i32, i32
  }
  func.func @transform_1(%arg0: i32) -> (i32, i32) {
    %c0_i32 = arith.constant 0 : i32
    %c0_i32_0 = arith.constant 0 : i32
    %c0_i32_1 = arith.constant 0 : i32
    return %c0_i32, %c0_i32_0 : i32, i32
  }
  func.func @transform_2(%arg0: i32) -> (i32, i32) {
    %c0_i32 = arith.constant 0 : i32
    %c0_i32_0 = arith.constant 0 : i32
    %c0_i32_1 = arith.constant 0 : i32
    return %c0_i32, %c0_i32_0 : i32, i32
  }
  func.func @transform_3(%arg0: i32) -> (i32, i32) {
    %c0_i32 = arith.constant 0 : i32
    %c0_i32_0 = arith.constant 0 : i32
    %c0_i32_1 = arith.constant 0 : i32
    return %c0_i32, %c0_i32_0 : i32, i32
  }
  func.func @transform_4(%arg0: i32) -> (i32, i32) {
    %c0_i32 = arith.constant 0 : i32
    %c0_i32_0 = arith.constant 0 : i32
    %c0_i32_1 = arith.constant 0 : i32
    return %c0_i32, %c0_i32_0 : i32, i32
  }
  func.func @transform_5(%arg0: i32) -> (i32, i32) {
    %c0_i32 = arith.constant 0 : i32
    %c0_i32_0 = arith.constant 0 : i32
    %c0_i32_1 = arith.constant 0 : i32
    return %c0_i32, %c0_i32_0 : i32, i32
  }
  func.func @transform_6(%arg0: i32) -> (i32, i32, i32) {
    %c0_i32 = arith.constant 0 : i32
    %c0_i32_0 = arith.constant 0 : i32
    %c0_i32_1 = arith.constant 0 : i32
    return %arg0, %c0_i32, %c0_i32_0 : i32, i32, i32
  }
}

</mosaic_0001>

<bundles_post_ra>
// kernel: tpu_custom_call.1
= control target key start
LH: loop header
LB: loop body
LE: loop exit
PB: predicated region body
PF: predicated region fallthrough
CT: control target
= control target key end

     0   :  { %11 = vsyncpa [#allocation3], 0  ;;  %s944_s0 = inlined_call_operand.vmem [shape: f32[2,16,64], index: 0, kind: input, shape index: {}]   ;;  %s945_s1 = inlined_call_operand.vmem [shape: bf16[20,16], index: 1, kind: input, shape index: {}]   ;;  %s946_s2 = inlined_call_operand.vmem [shape: f32[16,1], index: 2, kind: input, shape index: {}]   ;;  %s947_s3 = inlined_call_operand.vmem [shape: bf16[16,4], index: 3, kind: input, shape index: {}]   ;;  %s948_s4 = inlined_call_operand.vmem [shape: f32[16,1], index: 4, kind: input, shape index: {}]   ;;  %s949_s5 = inlined_call_operand.vmem [shape: f32[16,1], index: 5, kind: input, shape index: {}]   ;;  %s950_s6 = inlined_call_operand.hbm [shape: f32[2,16,64], index: 6, kind: output, shape index: {}]  }
   0x1   :  { %13 = vsyncpa [#allocation3 + $0x1], 0  ;;  %s806_s21 = smov 0   ;;  %s808_s22 = smov 0  }
   0x2   :  { %s810_s23 = smov 0   ;;  %s812_s24 = smov 0  }
   0x3 LB: > { %s827_s25 = sadd.s32 4294967295, %s766_s24   ;;  %s614_s26 = sadd.s32 4294967294, %s766_s24   ;;  %s766_s24 = sphi %s812_s24, %s956_s24   ;;  %s762_s23 = sphi %s810_s23, %s955_s23   ;;  %s758_s22 = sphi %s808_s22, %s954_s22   ;;  %s754_s21 = sphi %s806_s21, %s953_s21  }
   0x4   : > { %s831_s27 = sadd.s32 1, %s766_s24   ;;  %s157_s28 = sadd.s32 1, %s762_s23 }
   0x5   : > { %s154_s29 = ssub.s32 %s766_s24, %s831_s27  ;;  %p167_p0 = scmp.ne.s32.totalorder %s762_s23, %s758_s22 }
   0x6   : > { %p155_p1 = scmp.eq.s32.totalorder %s154_s29, 0  ;;  %p168_p2 = scmp.eq.s32.totalorder %s827_s25, 1 }
   0x7   : > { %p173_p3 = scmp.ne.s32.totalorder %s758_s22, %s754_s21  ;;  %p174_p4 = scmp.eq.s32.totalorder %s614_s26, 1 }
   0x8   : > { %s842_s30 = scalar_select %p155_p1, %s762_s23, %s157_s28  }
   0x9   : > { %p844_p5 = por %p168_p2, %p167_p0  ;;  %p848_p6 = por %p174_p4, %p173_p3 }
   0xa   : > { %p617_p7 = scmp.ge.s32.totalorder %s766_s24, 1  ;;  %p215_p8 = scmp.lt.s32.totalorder %s766_s24, 3 }
   0xc   : > { %p216_p9 = pnand %p617_p7, %p215_p8 }
   0xd   : > { %p245_p10 = scmp.lt.s32.totalorder (!%p216_p9), %s827_s25, 1  ;;  %s242_s17 = sand.u32 (!%p216_p9), 1, %s758_s22  }
   0xe   : > { %219 = sbr.rel (%p216_p9) target bundleno = 1280 (0x500), region = 44  ;;  %s618_s18 = sshll.u32 (!%p216_p9), %s242_s17, 4 }
   0xf   : > { %s650_s19 = sshll.u32 (!%p216_p9), %s827_s25, 4  ;;  %s244_s29 = scalar_lea.vmem (!%p216_p9), [#allocation2], %s618_s18 }
  0x10   : > { %s548_s28 = scalar_lea.hbm (!%p216_p9), %s950_s6, %s650_s19  ;;  %s549_s9 = sshll.u32 (!%p216_p9), %s244_s29, 4  ;;  %s550_s9 = int_to_ptr.vmem [resolvable:$true] %s549_s9 }
  0x11   : > { %s551_s10 = sshll.u32 (!%p216_p9), %s548_s28, 4  ;;  %s552_s10 = int_to_ptr.hbm [resolvable:$true] %s551_s10 }
  0x13   : > { %v260_v0 = vld [vmem:[%s946_s2 + $0x8] sm:$0xff]  ;;  %v768_v1 = vmov 0   ;;  %s246_s11 = scalar_select %p245_p10, %s827_s25, 1  ;;  %v259_v5 = vld [vmem:[%s946_s2] sm:$0xff]  ;;  %vm273_vm0 = vcmask 130048   ;;  %vm310_vm1 = vcmask 523264  }
  0x14   : > { %694 = vset.pattern.permute.xlu0 %v768_v1  ;;  %695 = vset.pattern.permute.xlu2 %v768_v1  ;;  %v648_v6 = vld [vmem:[%s945_s1] sm:$0xff]  ;;  %v256_v7 = vld [vmem:[%s945_s1 + $0x8] sm:$0x3]  ;;  %vm379_vm2 = vcmask 1043456   ;;  %vm372_vm3 = vcmask 31744   ;;  %vm488_vm4 = vcmask 1041408  }
  0x15   : > { %305 = vperm.xlu0 %694, %v260_v0   ;;  %s647_s12 = sshll.u32 %s246_s11, 4  ;;  %v270_v8 = vunpack.c.l.b16 %v256_v7  ;;  %v261_v42 = vld [vmem:[%s948_s4] sm:$0xff]  ;;  %v262_v43 = vld [vmem:[%s948_s4 + $0x8] sm:$0xff]  ;;  %s537_s25 = scalar_lea.sflag [#allocation3], %s242_s17 }
  0x16   : > { %s249_s15 = scalar_lea.vmem %s944_s0, %s647_s12  ;;  %v263_v44 = vld [vmem:[%s949_s5] sm:$0xff]  ;;  %v264_v45 = vld [vmem:[%s949_s5 + $0x8] sm:$0xff]  ;;  %s718_s11 = sshra.s32 %s552_s10, 4  ;;  %s719_s11 = int_to_ptr.hbm [resolvable:$true] %s718_s11 }
  0x17   : > { %v862_v2 = vld [vmem:[%s249_s15] sm:$0xff]  ;;  %v864_v3 = vld [vmem:[%s249_s15 + $0x8] sm:$0xff]  ;;  %v272_v9 = vpack.c.b16 %v270_v8, %v270_v8  ;;  %s720_s12 = scalar_lea.hbm %s719_s11, 16  ;;  %s724_s15 = scalar_lea.hbm %s950_s6, 32 }
  0x18   : > { %v253_v4 = vpack.c.bf16 %v864_v3, %v862_v2  ;;  %v649_v49 = vld [vmem:[%s947_s3] sm:$0xff]  ;;  %p721_p11 = scmp.ne.s32.totalorder %s719_s11, %s720_s12  ;;  %p725_p0 = scmp.lt.s32.totalorder %s719_s11, %s950_s6 }
  0x19   : > { %p726_p1 = scmp.lt.s32.totalorder %s724_s15, %s720_s12 }
  0x1a   : > { %287 = vmatpush.bf16.msra.mxu0 %v253_v4  ;;  %p722_p12 = pnand %p721_p11, %p844_p5 }
  0x1b   : > { %p727_p2 = por %p726_p1, %p725_p0 }
  0x1c   : > { %p723_p13 = pneg %p722_p12 }
  0x1d   : > { %300 = vperm.xlu0 %694, %v259_v5   ;;  %625 = vmatmul.msk.bf16.vlgmr.msra.gmra.mxu0 %vm273_vm0, %v648_v6 }
  0x1e   : > { %p728_p3 = pnand %p727_p2, %p723_p13 }
  0x2d   : > { %626 = vmatmul.msk.bf16.gmra.mxu0 %vm273_vm0, %v272_v9 }
  0x87   : > { %v306_v10 = vpop.permute.xlu0 %305 }
  0x8f   : > { %v301_v14 = vpop.permute.xlu0 %300 }
  0x9a   : > { %v289_v11 = vpop.f32.mrf.mxu0 }
  0x9b   : > { %v308_v15 = vadd.f32 %v301_v14, %v289_v11 }
  0xa2   : > { %v291_v12 = vpop.f32.mrf.mxu0 }
  0xa3   : > { %v309_v13 = vadd.f32 %v306_v10, %v291_v12 }
  0xa5   : > { %627 = vmatpush.xpose.msk.msra.mxu1 %vm310_vm1, %v309_v13 }
  0xa9   : > { %628 = vmatpush.xpose.msk.msra.mxu1 %vm310_vm1, %v308_v15 }
  0xaa   : > { %v294_v16 = vpop.f32.mrf.mxu0 }
  0xac   : > { %629 = vmatmul.msk.f32.vlgmr.msra.gmra.mxu1 %vm310_vm1, %v294_v16 }
  0xad   : > { %473 = vmatpush.msrb.mxu1 %v309_v13 }
  0xaf   : > { %474 = vmatpush.msrb.mxu1 %v308_v15 }
  0xb2   : > { %v296_v17 = vpop.f32.mrf.mxu0 }
 0x129   : > { %v337_v18 = vpop.f32.mrf.mxu1 }
 0x12a   : > { %340 = vxpose.xlu1.b32.start.end [1/1] (short) (narrow) %v337_v18, 16  ;;  %630 = vmatpush.msk.msra.mxu2 %vm379_vm2, %v337_v18 }
 0x1ce   : > { %v356_v19 = vpop.trf.xlu1 }
 0x1cf   : > { %631 = vmatmul.msk.f32.vlgmr.msra.gmra.mxu2 %vm372_vm3, %v356_v19 }
 0x1d6   : > { %v357_v20 = vpop.trf.xlu1 }
 0x1d7   : > { %632 = vmatmul.msk.f32.gmra.mxu2 %vm372_vm3, %v357_v20 }
 0x252   : > { %v400_v21 = vpop.f32.mrf.mxu2 }
 0x253   : > { %v406_v22 = vsel %vm273_vm0, %v400_v21, -inf }
 0x254   : > { %407 = vmax.xlane.f32.xlu2 %v406_v22 }
 0x25a   : > { %v403_v23 = vpop.f32.mrf.mxu2 }
 0x25b   : > { %v409_v24 = vsel %vm273_vm0, %v403_v23, -inf }
 0x25c   : > { %410 = vmax.xlane.f32.xlu1 %v409_v24 }
 0x2c7   : > { %v408_v25 = vpop.xlane.xlu2 %407 }
 0x2c8   : > { %v412_v26 = vsub.f32 %v400_v21, %v408_v25 }
 0x2ca   : > { %v414_v27 = vmul.f32 1.442695, %v412_v26 }
 0x2cc   : > { %696 = vpow2.f32 %v414_v27 }
 0x2cf   : > { %v411_v28 = vpop.xlane.xlu1 %410 }
 0x2d0   : > { %v413_v29 = vsub.f32 %v403_v23, %v411_v28 }
 0x2d2   : > { %v697_v30 = vpop.eup %696  ;;  %v416_v31 = vmul.f32 1.442695, %v413_v29 }
 0x2d3   : > { %v418_v32 = vsel %vm273_vm0, %v697_v30, 0.0 }
 0x2d4   : > { %698 = vpow2.f32 %v416_v31  ;;  %419 = vadd.xlane.f32.xlu0 %v418_v32 }
 0x2da   : > { %v699_v33 = vpop.eup %698 }
 0x2db   : > { %v421_v34 = vsel %vm273_vm0, %v699_v33, 0.0 }
 0x2dc   : > { %422 = vadd.xlane.f32.xlu2 %v421_v34 }
 0x2f4   : > { %508 = vperm.xlu2 %695, %v261_v42  }
 0x2fc   : > { %513 = vperm.xlu2 %695, %v262_v43  }
 0x304   : > { %520 = vperm.xlu2 %695, %v263_v44  }
 0x30c   : > { %525 = vperm.xlu2 %695, %v264_v45  }
 0x347   : > { %v420_v35 = vpop.xlane.xlu0 %419 }
 0x34f   : > { %v423_v36 = vpop.xlane.xlu2 %422 }
 0x350   : > { %700 = vrcp.f32 %v423_v36 }
 0x351   : > { %702 = vrcp.f32 %v420_v35 }
 0x356   : > { %v701_v37 = vpop.eup %700 }
 0x357   : > { %v427_v38 = vmul.f32 %v701_v37, %v699_v33  ;;  %v703_v39 = vpop.eup %702  ;;  %v509_v50 = vpop.permute.xlu2 %508 }
 0x358   : > { %v426_v40 = vmul.f32 %v703_v39, %v697_v30 }
 0x359   : > { %633 = vmatpush.xpose.msk.msra.mxu3 %vm273_vm0, %v427_v38 }
 0x35d   : > { %634 = vmatpush.xpose.msk.msra.mxu3 %vm273_vm0, %v426_v40 }
 0x35f   : > { %v514_v51 = vpop.permute.xlu2 %513 }
 0x360   : > { %635 = vmatmul.msk.f32.vlgmr.msra.gmra.mxu3 %vm273_vm0, %v337_v18 }
 0x367   : > { %v521_v52 = vpop.permute.xlu2 %520 }
 0x36f   : > { %v526_v60 = vpop.permute.xlu2 %525 }
 0x3e3   : > { %v453_v41 = vpop.f32.mrf.mxu3 }
 0x3e4   : > { %636 = vmatmul.msk.f32.vlgmr.msrb.gmra.mxu1 %vm273_vm0, %v453_v41 }
 0x461   : > { %v476_v46 = vpop.f32.mrf.mxu1 }
 0x462   : > { %v479_v47 = vpack.c.bf16 %v476_v46, %v476_v46 }
 0x464   : > { %v490_v48 = vsel %vm488_vm4, %v479_v47, 0 }
 0x465   : > { %499 = vmatpush.bf16.msrb.mxu3 %v490_v48 }
 0x468   : > { %641 = vmatmul.msk.bf16.vlgmr.msrb.gmra.mxu3 %vm372_vm3, %v649_v49 }
 0x4eb   : > { %v501_v53 = vpop.f32.mrf.mxu3 }
 0x4ec   : > { %v516_v54 = vmul.f32 %v509_v50, %v501_v53 }
 0x4ee   : > { %v528_v55 = vadd.f32 %v521_v52, %v516_v54 }
 0x4f0   : > { %v530_v56 = vmax.f32 %v528_v55, 0.0 }
 0x4f2   : > { %v532_v57 = vadd.f32 %v530_v56, %v862_v2 }
 0x4f3   : > { %v503_v58 = vpop.f32.mrf.mxu3 }
 0x4f4   : > { %534 = vst.msk [vmem:[%s244_s29] sm:$0xff] %vm310_vm1, %v532_v57  ;;  %v517_v59 = vmul.f32 %v514_v51, %v503_v58 }
 0x4f6   : > { %v529_v61 = vadd.f32 %v526_v60, %v517_v59 }
 0x4f8   : > { %v531_v62 = vmax.f32 %v529_v61, 0.0 }
 0x4fa   : > { %v533_v63 = vadd.f32 %v531_v62, %v864_v3 }
 0x4fc   : > { %535 = vst.msk [vmem:[%s244_s29 + $0x8] sm:$0xff] %vm310_vm1, %v533_v63 }
 0x4fd   : > { %731 = shalt.err (!%p728_p3)
}
 0x4fe   : > { %s769_s17 = smov 128   ;;  %s770_s19 = smov 8  }
 0x4ff   : > { %651 = dma.vmem_to_hbm [thread:$0]  (%p844_p5), %s550_s9, 256, %s552_s10, %s537_s25, %s769_s17, %s769_s17, %s770_s19  }
 0x500 PF: > { %p657_p4 = scmp.ge.s32.totalorder %s766_s24, 2  ;;  %s566_s20 = sand.u32 1, %s754_s21  }
 0x501   : > { %s567_s26 = scalar_lea.sflag [#allocation3], %s566_s20 }
 0x502   : > { %p654_p7 = pnand %p657_p4, %p848_p6 }
 0x504   : > { %p655_p8 = pneg %p654_p7 }
 0x506   : > { %749 = dma.done.wait (%p655_p8), %s567_s26, 256  }
 0x507   : > { %751 = vsyncadd (%p655_p8), %s567_s26, 4294967040  ;;  %p16_p9 = scmp.ge.s32.totalorder %s831_s27, 4   ;;  %s953_s21 = smov %s758_s22 }
 0x508   : > { %s954_s22 = smov %s762_s23  ;;  %s955_s23 = smov %s842_s30 }
 0x509   : > { %s956_s24 = smov %s831_s27  ;;  %18 = sbr.rel (!%p16_p9) target bundleno = 3 (0x3), region = 79 }
 0x50e   :  { %573 = vsyncpa [#allocation3], 1 }
 0x50f   :  { %575 = vsyncpa [#allocation3 + $0x1], 1 }

</bundles_post_ra>
